<compile_context>
chip_gen: v5e
topology: v5e:2x2
jax: 0.10.0
libtpu: 0.0.40
codegen_flags: <defaults>
</compile_context>

<pallas_src>
import functools

import jax
import jax.numpy as jnp
from jax.experimental import pallas as pl
from jax.experimental.pallas import tpu as pltpu


# --------------------------------------------------------------------------
# Fused kernel: one (batch, lane-tile) step of conv1 -> LeakyReLU -> conv2
# --------------------------------------------------------------------------

def _fused_encoder_kernel(ph_ref, w1_ref, b1_ref, w2_ref, b2_ref, o_ref, *,
                          c_out, n_ho_valid, negative_slope):
    """ph_ref : (1, KP, TQ)       stride-4 phase planes of x (sublanes); lanes = out pos
       w1_ref : (3*c_out, KP)     folded conv1 weight -> rows [h_even | h_odd | h_prev]
       b1_ref : (3*c_out, 1)      conv1 bias (repeated for the three streams)
       w2_ref : (c_out, 3*c_out)  folded conv2 weight, tap order [prev, even, odd]
       b2_ref : (c_out, 1)
       o_ref  : (1, c_out, TQ)    lane-dense output store
    """
    tq = o_ref.shape[-1]

    # conv1 for the three sigma(h) streams this tile needs: h[2j], h[2j+1], h[2j-1].
    # (K and M are tiny; the kernel is HBM-bound, so the under-filled MXU push is
    #  effectively free and keeps the VPU available for the epilogue.)
    pre = jnp.dot(w1_ref[...], ph_ref[0], preferred_element_type=jnp.float32)
    pre = pre + b1_ref[...]
    act = jnp.where(pre >= 0.0, pre, negative_slope * pre)      # fused LeakyReLU (f32 VPU)

    h_even = act[0 * c_out:1 * c_out, :]          # sigma(h[2j])
    h_odd  = act[1 * c_out:2 * c_out, :]          # sigma(h[2j+1])
    h_prev = act[2 * c_out:3 * c_out, :]          # sigma(h[2j-1])

    # conv2's implicit zero padding of sigma(h): position -1 and (when L1 is odd)
    # the phantom odd position past the end must contribute 0, not sigma(b1).
    j = pl.program_id(1) * tq + jax.lax.broadcasted_iota(jnp.int32, (1, tq), 1)
    h_odd  = jnp.where(j < n_ho_valid, h_odd, 0.0)
    h_prev = jnp.where((j >= 1) & (j <= n_ho_valid), h_prev, 0.0)

    # conv2 as one folded matmul over the 3*c_out stacked taps.
    taps = jnp.concatenate([h_prev, h_even, h_odd], axis=0)     # (3*c_out, TQ)
    y = jnp.dot(w2_ref[...], taps, preferred_element_type=jnp.float32) + b2_ref[...]
    o_ref[0] = y.astype(o_ref.dtype)


# --------------------------------------------------------------------------
# Wrapper: weight folding, phase-plane prep, tiling, pallas_call
# --------------------------------------------------------------------------

def _round_up(n, m):
    return ((n + m - 1) // m) * m


def audio_encoder_fused(x, w1, b1, w2, b2, *, negative_slope=0.01,
                        operand_dtype=jnp.float32, max_tile_out=4096):
    """Fused Conv1d(k3,s2,p1) -> LeakyReLU(negative_slope) -> Conv1d(k3,s2,p1).

    x : (B, C_in, L) f32;  w1: (C_out, C_in, 3);  w2: (C_out, C_out, 3)
    returns (B, C_out, L2) f32 with L2 = ceil(ceil(L/2)/2)  (same as PyTorch).
    """
    B, C_in, L = x.shape
    C_out = w1.shape[0]
    L1 = (L - 1) // 2 + 1            # ceil(L/2)   -- length after conv1
    L2 = (L1 - 1) // 2 + 1           # ceil(L1/2)  -- length after conv2
    Q = L2
    n_ho_valid = L1 // 2             # number of real odd h positions h[2j+1]

    # Lane tiling over final output positions (multiples of 128).
    max_tile_out = _round_up(max_tile_out, 128)
    TQ = min(max_tile_out, _round_up(Q, 128))
    NT = pl.cdiv(Q, TQ)
    if B == 1 and NT == 1 and TQ >= 256:   # keep >=2 parallel blocks for v7x's 2 TCs
        TQ = _round_up(TQ // 2, 128)
        NT = pl.cdiv(Q, TQ)
    Qp = NT * TQ

    # ---- single cheap prep pass over x: stride-4 phase planes (no h im2col) ----
    # plane order per input channel:
    #   p0: x[4j-1]  p1: x[4j]  p2: x[4j+1]  p3: x[4j+2]  p4: x[4j+3]
    #   p5: x[4j-3]  p6: x[4j-2]          (shifts carry the conv's zero padding)
    xpad = jnp.pad(x, ((0, 0), (0, 0), (0, 4 * Qp - L)))
    xr = xpad.reshape(B, C_in, Qp, 4)
    x0, x1, x2, x3 = xr[..., 0], xr[..., 1], xr[..., 2], xr[..., 3]
    shift1 = lambda a: jnp.pad(a[:, :, :-1], ((0, 0), (0, 0), (1, 0)))
    planes = jnp.concatenate(
        [shift1(x3), x0, x1, x2, x3, shift1(x1), shift1(x2)], axis=1)  # (B, 7*C_in, Qp)
    K1 = 7 * C_in
    KP = _round_up(K1, 8)            # sublane-align the contraction (tiny zero planes)
    if KP > K1:
        planes = jnp.pad(planes, ((0, 0), (0, KP - K1), (0, 0)))
    planes = planes.astype(operand_dtype)

    # ---- fold the tiny weights (they stay resident in VMEM across the grid) ----
    t0, t1, t2 = w1[:, :, 0], w1[:, :, 1], w1[:, :, 2]
    Z = jnp.zeros_like(t0)
    w_even = jnp.concatenate([t0, t1, t2, Z, Z, Z, Z], axis=1)   # h[2j]
    w_odd  = jnp.concatenate([Z, Z, t0, t1, t2, Z, Z], axis=1)   # h[2j+1]
    w_prev = jnp.concatenate([t2, Z, Z, Z, Z, t0, t1], axis=1)   # h[2j-1]
    w1f = jnp.concatenate([w_even, w_odd, w_prev], axis=0)       # (3*C_out, 7*C_in)
    if KP > K1:
        w1f = jnp.pad(w1f, ((0, 0), (0, KP - K1)))
    w1f = w1f.astype(operand_dtype)
    b1f = jnp.concatenate([b1, b1, b1]).reshape(3 * C_out, 1).astype(jnp.float32)
    # conv2 taps stacked as [h_prev, h_even, h_odd]  <->  PyTorch taps [0, 1, 2]
    w2f = jnp.concatenate([w2[:, :, 0], w2[:, :, 1], w2[:, :, 2]],
                          axis=1).astype(jnp.float32)            # (C_out, 3*C_out)
    b2c = b2.reshape(C_out, 1).astype(jnp.float32)

    kernel = functools.partial(_fused_encoder_kernel, c_out=C_out,
                               n_ho_valid=n_ho_valid,
                               negative_slope=negative_slope)
    return pl.pallas_call(
        kernel,
        out_shape=jax.ShapeDtypeStruct((B, C_out, L2), jnp.float32),
        grid=(B, NT),
        in_specs=[
            pl.BlockSpec((1, KP, TQ), lambda b, t: (b, 0, t)),
            pl.BlockSpec((3 * C_out, KP), lambda b, t: (0, 0)),
            pl.BlockSpec((3 * C_out, 1), lambda b, t: (0, 0)),
            pl.BlockSpec((C_out, 3 * C_out), lambda b, t: (0, 0)),
            pl.BlockSpec((C_out, 1), lambda b, t: (0, 0)),
        ],
        out_specs=pl.BlockSpec((1, C_out, TQ), lambda b, t: (b, 0, t)),
        compiler_params=pltpu.CompilerParams(
            dimension_semantics=("parallel", "parallel")),
    )(planes, w1f, b1f, w2f, b2c)


# --------------------------------------------------------------------------
# AudioEncoder module (Conv1d -> LeakyReLU -> Conv1d), weights built in-script
# --------------------------------------------------------------------------

class AudioEncoderPallas:
    def __init__(self, in_channels, out_channels, scale_factor, seed=0):
        self.scale_factor = scale_factor       # stored (unused in forward), as in spec
        k = jax.random.split(jax.random.PRNGKey(seed), 4)
        n = jax.random.normal
        fan1 = in_channels * 3
        fan2 = out_channels * 3
        self.w1 = (n(k[0], (out_channels, in_channels, 3), jnp.float32)
                   / jnp.sqrt(fan1))
        self.b1 = 0.01 * n(k[1], (out_channels,), jnp.float32)
        self.w2 = (n(k[2], (out_channels, out_channels, 3), jnp.float32)
                   / jnp.sqrt(fan2))
        self.b2 = 0.01 * n(k[3], (out_channels,), jnp.float32)

    def forward(self, x):
        # Single fused pallas_call: Conv1d(k3,s2,p1) + LeakyReLU(0.01) + Conv1d(k3,s2,p1)
        return audio_encoder_fused(x, self.w1, self.b1, self.w2, self.b2,
                                   negative_slope=0.01)


# --------------------------------------------------------------------------
# Pure-JAX reference (for correctness check)
# --------------------------------------------------------------------------

def _conv1d_ref(x, w, b):
    y = jax.lax.conv_general_dilated(
        x, w, window_strides=(2,), padding=((1, 1),),
        dimension_numbers=("NCH", "OIH", "NCH"),
        precision=jax.lax.Precision.HIGHEST)
    return y + b[None, :, None]


def audio_encoder_ref(x, w1, b1, w2, b2):
    h = _conv1d_ref(x, w1, b1)
    h = jnp.where(h >= 0.0, h, 0.01 * h)
    return _conv1d_ref(h, w2, b2)


# --------------------------------------------------------------------------
# main
# --------------------------------------------------------------------------

if __name__ == "__main__":
    B, C_in, C_out, L = 2, 1, 8, 4096        # small mono audio batch
    scale_factor = 4                         # two stride-2 convs

    key = jax.random.PRNGKey(0)
    x = jax.random.normal(key, (B, C_in, L), jnp.float32)

    enc = AudioEncoderPallas(in_channels=C_in, out_channels=C_out,
                             scale_factor=scale_factor, seed=0)

    # -- main path: fused kernel, f32 operands --
    y = jax.jit(enc.forward)(x)
    jax.block_until_ready(y)

    L1 = (L - 1) // 2 + 1
    L2 = (L1 - 1) // 2 + 1
    assert y.shape == (B, C_out, L2), y.shape
    assert y.dtype == jnp.float32
    assert bool(jnp.all(jnp.isfinite(y)))

    y_ref = audio_encoder_ref(x, enc.w1, enc.b1, enc.w2, enc.b2)
    assert bool(jnp.allclose(y, y_ref, rtol=1e-3, atol=1e-3)), \
        float(jnp.max(jnp.abs(y - y_ref)))

    # -- odd intermediate length + multi-tile grid (exercises masks & tiling) --
    Lb = 1022                                    # L1 = 511 (odd), L2 = 256
    xb = jax.random.normal(jax.random.PRNGKey(1), (B, C_in, Lb), jnp.float32)
    run_tiled = jax.jit(functools.partial(audio_encoder_fused, max_tile_out=128))
    yb = run_tiled(xb, enc.w1, enc.b1, enc.w2, enc.b2)
    jax.block_until_ready(yb)
    yb_ref = audio_encoder_ref(xb, enc.w1, enc.b1, enc.w2, enc.b2)
    assert yb.shape == yb_ref.shape
    assert bool(jnp.allclose(yb, yb_ref, rtol=1e-3, atol=1e-3)), \
        float(jnp.max(jnp.abs(yb - yb_ref)))

    # -- bf16 operand storage (v6e/v7x bandwidth option; epilogue stays f32) --
    run_bf16 = jax.jit(functools.partial(audio_encoder_fused,
                                         operand_dtype=jnp.bfloat16))
    ybf = run_bf16(x, enc.w1, enc.b1, enc.w2, enc.b2)
    jax.block_until_ready(ybf)
    assert ybf.dtype == jnp.float32
    assert bool(jnp.allclose(ybf, y_ref, rtol=5e-2, atol=5e-2)), \
        float(jnp.max(jnp.abs(ybf - y_ref)))

    print("KERNEL_OK")
</pallas_src>

<mosaic_0001>
module attributes {stable_mosaic.version = 11 : i64} {
  func.func @_fused_encoder_kernel(%arg0: i32, %arg1: i32, %arg2: memref<1x8x1024xf32, #tpu.memory_space<vmem>>, %arg3: memref<24x8xf32, #tpu.memory_space<vmem>>, %arg4: memref<24x1xf32, #tpu.memory_space<vmem>>, %arg5: memref<8x24xf32, #tpu.memory_space<vmem>>, %arg6: memref<8x1xf32, #tpu.memory_space<vmem>>, %arg7: memref<1x8x1024xf32, #tpu.memory_space<vmem>>) attributes {dimension_semantics = [#tpu.dimension_semantics<parallel>, #tpu.dimension_semantics<parallel>], iteration_bounds = array<i64: 2, 1>, scalar_prefetch = 0 : i64, scratch_operands = 0 : i64, tpu.core_type = #tpu.core_type<tc>, window_params = [{transform_indices = @transform_0, window_bounds = array<i64: 1, 8, 1024>}, {pipeline_mode = #tpu.pipeline_mode<synchronous>, transform_indices = @transform_1, window_bounds = array<i64: 24, 8>}, {pipeline_mode = #tpu.pipeline_mode<synchronous>, transform_indices = @transform_2, window_bounds = array<i64: 24, 1>}, {pipeline_mode = #tpu.pipeline_mode<synchronous>, transform_indices = @transform_3, window_bounds = array<i64: 8, 24>}, {pipeline_mode = #tpu.pipeline_mode<synchronous>, transform_indices = @transform_4, window_bounds = array<i64: 8, 1>}, {transform_indices = @transform_5, window_bounds = array<i64: 1, 8, 1024>}]} {
    %c0 = arith.constant 0 : index
    %c0_0 = arith.constant 0 : index
    %0 = vector.load %arg3[%c0, %c0_0] : memref<24x8xf32, #tpu.memory_space<vmem>>, vector<24x8xf32>
    %c0_1 = arith.constant 0 : index
    %c0_2 = arith.constant 0 : index
    %c0_3 = arith.constant 0 : index
    %1 = vector.load %arg2[%c0_1, %c0_2, %c0_3] : memref<1x8x1024xf32, #tpu.memory_space<vmem>>, vector<1x8x1024xf32>
    %2 = vector.shape_cast %1 : vector<1x8x1024xf32> to vector<8x1024xf32>
    %cst = arith.constant dense<0.000000e+00> : vector<24x1024xf32>
    %3 = tpu.matmul %0, %2, %cst {dimension_numbers = #tpu.dot_dimension_numbers<[1], [0], [0], [1], [0, 0, 1, 1], [], []>} : vector<24x8xf32>, vector<8x1024xf32>, vector<24x1024xf32> -> vector<24x1024xf32>
    %c0_4 = arith.constant 0 : index
    %c0_5 = arith.constant 0 : index
    %4 = vector.load %arg4[%c0_4, %c0_5] : memref<24x1xf32, #tpu.memory_space<vmem>>, vector<24x1xf32>
    %5 = vector.broadcast %4 : vector<24x1xf32> to vector<24x1024xf32>
    %6 = arith.addf %3, %5 : vector<24x1024xf32>
    %cst_6 = arith.constant 0.000000e+00 : f32
    %7 = vector.broadcast %cst_6 : f32 to vector<24x1024xf32>
    %8 = arith.cmpf oge, %6, %7 : vector<24x1024xf32>
    %cst_7 = arith.constant 0.00999999977 : f32
    %9 = vector.broadcast %cst_7 : f32 to vector<24x1024xf32>
    %10 = arith.mulf %9, %6 : vector<24x1024xf32>
    %11 = arith.select %8, %6, %10 : vector<24x1024xi1>, vector<24x1024xf32>
    %12 = vector.extract_strided_slice %11 {offsets = [0, 0], sizes = [8, 1024], strides = [1, 1]} : vector<24x1024xf32> to vector<8x1024xf32>
    %13 = vector.extract_strided_slice %11 {offsets = [8, 0], sizes = [8, 1024], strides = [1, 1]} : vector<24x1024xf32> to vector<8x1024xf32>
    %14 = vector.extract_strided_slice %11 {offsets = [16, 0], sizes = [8, 1024], strides = [1, 1]} : vector<24x1024xf32> to vector<8x1024xf32>
    %c1024_i32 = arith.constant 1024 : i32
    %15 = arith.muli %arg1, %c1024_i32 : i32
    %16 = tpu.iota {dimensions = array<i32: 1>} : vector<1x1024xi32>
    %17 = vector.broadcast %15 : i32 to vector<1x1024xi32>
    %18 = arith.addi %17, %16 : vector<1x1024xi32>
    %c1024_i32_8 = arith.constant 1024 : i32
    %19 = vector.broadcast %c1024_i32_8 : i32 to vector<1x1024xi32>
    %20 = arith.cmpi slt, %18, %19 : vector<1x1024xi32>
    %cst_9 = arith.constant 0.000000e+00 : f32
    %21 = vector.shape_cast %20 : vector<1x1024xi1> to vector<1x1024xi1>
    %22 = vector.broadcast %21 : vector<1x1024xi1> to vector<8x1024xi1>
    %23 = vector.broadcast %cst_9 : f32 to vector<8x1024xf32>
    %24 = arith.select %22, %13, %23 : vector<8x1024xi1>, vector<8x1024xf32>
    %c1_i32 = arith.constant 1 : i32
    %25 = vector.broadcast %c1_i32 : i32 to vector<1x1024xi32>
    %26 = arith.cmpi sge, %18, %25 : vector<1x1024xi32>
    %c1024_i32_10 = arith.constant 1024 : i32
    %27 = vector.broadcast %c1024_i32_10 : i32 to vector<1x1024xi32>
    %28 = arith.cmpi sle, %18, %27 : vector<1x1024xi32>
    %29 = arith.andi %26, %28 : vector<1x1024xi1>
    %cst_11 = arith.constant 0.000000e+00 : f32
    %30 = vector.shape_cast %29 : vector<1x1024xi1> to vector<1x1024xi1>
    %31 = vector.broadcast %30 : vector<1x1024xi1> to vector<8x1024xi1>
    %32 = vector.broadcast %cst_11 : f32 to vector<8x1024xf32>
    %33 = arith.select %31, %14, %32 : vector<8x1024xi1>, vector<8x1024xf32>
    %34 = tpu.concatenate %33, %12, %24 in 0 : vector<8x1024xf32>, vector<8x1024xf32>, vector<8x1024xf32> -> vector<24x1024xf32>
    %c0_12 = arith.constant 0 : index
    %c0_13 = arith.constant 0 : index
    %35 = vector.load %arg5[%c0_12, %c0_13] : memref<8x24xf32, #tpu.memory_space<vmem>>, vector<8x24xf32>
    %cst_14 = arith.constant dense<0.000000e+00> : vector<8x1024xf32>
    %36 = tpu.matmul %35, %34, %cst_14 {dimension_numbers = #tpu.dot_dimension_numbers<[1], [0], [0], [1], [0, 0, 1, 1], [], []>} : vector<8x24xf32>, vector<24x1024xf32>, vector<8x1024xf32> -> vector<8x1024xf32>
    %c0_15 = arith.constant 0 : index
    %c0_16 = arith.constant 0 : index
    %37 = vector.load %arg6[%c0_15, %c0_16] : memref<8x1xf32, #tpu.memory_space<vmem>>, vector<8x1xf32>
    %38 = vector.broadcast %37 : vector<8x1xf32> to vector<8x1024xf32>
    %39 = arith.addf %36, %38 : vector<8x1024xf32>
    %c0_17 = arith.constant 0 : index
    %c0_18 = arith.constant 0 : index
    %c0_19 = arith.constant 0 : index
    %40 = vector.load %arg7[%c0_17, %c0_18, %c0_19] : memref<1x8x1024xf32, #tpu.memory_space<vmem>>, vector<1x8x1024xf32>
    %41 = vector.shape_cast %40 : vector<1x8x1024xf32> to vector<8x1024xf32>
    %42 = vector.shape_cast %39 : vector<8x1024xf32> to vector<1x8x1024xf32>
    tpu.vector_store %arg7[%c0_17, %c0_18, %c0_19], %42 {strides = array<i32>} : memref<1x8x1024xf32, #tpu.memory_space<vmem>>, vector<1x8x1024xf32>,
    return
  }
  func.func @transform_0(%arg0: i32, %arg1: i32) -> (i32, i32, i32) {
    %c0_i32 = arith.constant 0 : i32
    %c0_i32_0 = arith.constant 0 : i32
    return %arg0, %c0_i32, %arg1 : i32, i32, i32
  }
  func.func @transform_1(%arg0: i32, %arg1: i32) -> (i32, i32) {
    %c0_i32 = arith.constant 0 : i32
    %c0_i32_0 = arith.constant 0 : i32
    %c0_i32_1 = arith.constant 0 : i32
    return %c0_i32, %c0_i32_0 : i32, i32
  }
  func.func @transform_2(%arg0: i32, %arg1: i32) -> (i32, i32) {
    %c0_i32 = arith.constant 0 : i32
    %c0_i32_0 = arith.constant 0 : i32
    %c0_i32_1 = arith.constant 0 : i32
    return %c0_i32, %c0_i32_0 : i32, i32
  }
  func.func @transform_3(%arg0: i32, %arg1: i32) -> (i32, i32) {
    %c0_i32 = arith.constant 0 : i32
    %c0_i32_0 = arith.constant 0 : i32
    %c0_i32_1 = arith.constant 0 : i32
    return %c0_i32, %c0_i32_0 : i32, i32
  }
  func.func @transform_4(%arg0: i32, %arg1: i32) -> (i32, i32) {
    %c0_i32 = arith.constant 0 : i32
    %c0_i32_0 = arith.constant 0 : i32
    %c0_i32_1 = arith.constant 0 : i32
    return %c0_i32, %c0_i32_0 : i32, i32
  }
  func.func @transform_5(%arg0: i32, %arg1: i32) -> (i32, i32, i32) {
    %c0_i32 = arith.constant 0 : i32
    %c0_i32_0 = arith.constant 0 : i32
    return %arg0, %c0_i32, %arg1 : i32, i32, i32
  }
}

</mosaic_0001>

<bundles_post_ra>
// kernel: forward.1
= control target key start
LH: loop header
LB: loop body
LE: loop exit
PB: predicated region body
PF: predicated region fallthrough
CT: control target
= control target key end

     0   :  { %10 = vsyncpa [#allocation3], 0  ;;  %s1365_s0 = inlined_call_operand.vmem [shape: f32[2,8,1024], index: 0, kind: input, shape index: {}]   ;;  %s1366_s1 = inlined_call_operand.vmem [shape: f32[24,8], index: 1, kind: input, shape index: {}]   ;;  %s1367_s2 = inlined_call_operand.vmem [shape: f32[24,1], index: 2, kind: input, shape index: {}]   ;;  %s1368_s3 = inlined_call_operand.vmem [shape: f32[8,24], index: 3, kind: input, shape index: {}]   ;;  %s1369_s4 = inlined_call_operand.vmem [shape: f32[8,1], index: 4, kind: input, shape index: {}]   ;;  %s1370_s5 = inlined_call_operand.hbm [shape: f32[2,8,1024], index: 5, kind: output, shape index: {}]  }
   0x1   :  { %12 = vsyncpa [#allocation3 + $0x1], 0  ;;  %s1163_s18 = smov 0   ;;  %s1165_s19 = smov 0  }
   0x2   :  { %s1167_s20 = smov 0   ;;  %s1169_s21 = smov 0  }
   0x3   :  { %s1171_s22 = smov 0   ;;  %s1173_s23 = smov 0  }
   0x4 LB: > { %s946_s24 = sadd.s32 4294967295, %s1130_s23   ;;  %s947_s25 = sadd.s32 4294967294, %s1130_s23   ;;  %s1130_s23 = sphi %s1173_s23, %s18_s23   ;;  %s1126_s22 = sphi %s1171_s22, %s1377_s22   ;;  %s1122_s21 = sphi %s1169_s21, %s1376_s21   ;;  %s1118_s20 = sphi %s1167_s20, %s1375_s20   ;;  %s1114_s19 = sphi %s1165_s19, %s1374_s19   ;;  %s1110_s18 = sphi %s1163_s18, %s1373_s18  }
   0x5   : > { %s30_s26 = sadd.s32 1, %s1126_s22  ;;  %s151_s27 = sadd.s32 1, %s1118_s20 }
   0x6   : > { %p32_p0 = scmp.ge.s32.totalorder %s30_s26, 2  ;;  %p161_p1 = scmp.ne.s32.totalorder %s1118_s20, %s1114_s19 }
   0x7   : > { %p162_p2 = scmp.eq.s32.totalorder %s946_s24, 1  ;;  %p167_p3 = scmp.ne.s32.totalorder %s1114_s19, %s1110_s18 }
   0x8   : > { %s1379_s26 = smov (%p32_p0, %s30_s26), 0  ;;  %p168_p5 = scmp.eq.s32.totalorder %s947_s25, 1 }
   0x9   : > { %p1203_p4 = por %p162_p2, %p161_p1  ;;  %s146_s29 = ssub.s32 %s1126_s22, %s1379_s26 }
   0xa   : > { %p950_p6 = scmp.ge.s32.totalorder %s1130_s23, 1  ;;  %p149_p7 = scmp.eq.s32.totalorder %s146_s29, 0 }
   0xb   : > { %p1210_p8 = por %p168_p5, %p167_p3  ;;  %p211_p9 = scmp.lt.s32.totalorder %s1130_s23, 3 }
   0xc   : > { %s1216_s6 = scalar_select %p149_p7, %s1118_s20, %s151_s27  }
   0xd   : > { %p212_p10 = pnand %p950_p6, %p211_p9 }
   0xe   : > { %p244_p11 = scmp.lt.s32.totalorder (!%p212_p10), %s1122_s21, 1  ;;  %s240_s13 = sand.u32 (!%p212_p10), 1, %s1114_s19  }
   0xf   : > { %215 = sbr.rel (%p212_p10) target bundleno = 344 (0x158), region = 40  ;;  %s951_s14 = sshll.u32 (!%p212_p10), %s240_s13, 6 }
  0x10   : > { %s993_s16 = sshll.u32 (!%p212_p10), %s1122_s21, 6  ;;  %s852_s7 = scalar_lea.sflag (!%p212_p10), [#allocation3], %s240_s13 }
  0x11   : > { %s865_s25 = scalar_lea.hbm (!%p212_p10), %s1370_s5, %s993_s16  ;;  %s1072_s11 = scalar_lea.hbm (!%p212_p10), %s1370_s5, 128 }
  0x12   : > { %s869_s29 = sshll.u32 (!%p212_p10), %s865_s25, 4  ;;  %s870_s29 = int_to_ptr.hbm [resolvable:$true] %s869_s29 }
  0x13   : > { %s1066_s8 = sshra.s32 (!%p212_p10), %s870_s29, 4  ;;  %s1067_s8 = int_to_ptr.hbm [resolvable:$true] %s1066_s8 }
  0x14   : > { %v266_v0 = vld [vmem:[%s1367_s2 + $0x8] sm:$0xff]  ;;  %v1132_v1 = vmov 0   ;;  %s245_s9 = scalar_select %p244_p11, %s1122_s21, 1  ;;  %v267_v2 = vld [vmem:[%s1367_s2 + $0x10] sm:$0xff]  ;;  %v254_v3 = vld [vmem:[%s1366_s1] sm:$0xff]  ;;  %vm283_vm0 = vcmask 64512   ;;  %v574_v22 = vlaneseq }
  0x15   : > { %1050 = vset.pattern.permute.xlu0 %v1132_v1  ;;  %1051 = vset.pattern.permute.xlu1 %v1132_v1  ;;  %v265_v12 = vld [vmem:[%s1367_s2] sm:$0xff]  ;;  %v255_v13 = vld [vmem:[%s1366_s1 + $0x8] sm:$0xff]  ;;  %v256_v15 = vld [vmem:[%s1366_s1 + $0x10] sm:$0xff]  ;;  %vm679_vm12 = vcmask 195584   ;;  %s1068_s21 = scalar_lea.hbm %s1067_s8, 64  ;;  %p1073_p1 = scmp.lt.s32.totalorder %s1067_s8, %s1370_s5 }
  0x16   : > { %275 = vperm.xlu0 %1050, %v266_v0   ;;  %280 = vperm.xlu1 %1051, %v267_v2   ;;  %s992_s12 = sshll.u32 %s245_s9, 6  ;;  %v673_v14 = vld [vmem:[%s1369_s4] sm:$0xff]  ;;  %v575_v31 = vand.u32 127, %v574_v22  ;;  %p1069_p12 = scmp.ne.s32.totalorder %s1067_s8, %s1068_s21 }
  0x17   : > { %s251_s15 = scalar_lea.vmem %s1365_s0, %s992_s12  ;;  %v1287_v59 = vld [vmem:[%s1368_s3] sm:$0xff]  ;;  %p1074_p2 = scmp.lt.s32.totalorder %s1072_s11, %s1068_s21 }
  0x18   : > { %v257_v4 = vld [vmem:[%s251_s15] sm:$0xff]  ;;  %v258_v5 = vld [vmem:[%s251_s15 + $0x8] sm:$0xff]  ;;  %v259_v6 = vld [vmem:[%s251_s15 + $0x10] sm:$0xff]  ;;  %vm624_vm5 = vcmp.ge.s32.totalorder %v575_v31, 1  ;;  %p1070_p13 = pnand %p1069_p12, %p1203_p4 }
  0x19   : > { %308 = vmatpush.msra.mxu0 %v257_v4  ;;  %334 = vmatpush.msra.mxu1 %v258_v5  ;;  %v260_v7 = vld [vmem:[%s251_s15 + $0x18] sm:$0xff]  ;;  %v263_v8 = vld [vmem:[%s251_s15 + $0x30] sm:$0xff]  ;;  %v261_v10 = vld [vmem:[%s251_s15 + $0x20] sm:$0xff]  ;;  %p1075_p3 = por %p1074_p2, %p1073_p1 }
  0x1a   : > { %360 = vmatpush.msra.mxu2 %v259_v6  ;;  %386 = vmatpush.msra.mxu3 %v260_v7  ;;  %v264_v9 = vld [vmem:[%s251_s15 + $0x38] sm:$0xff]  ;;  %v262_v11 = vld [vmem:[%s251_s15 + $0x28] sm:$0xff]  ;;  %s242_s15 = scalar_lea.vmem [#allocation2], %s951_s14  ;;  %p1071_p0 = pneg %p1070_p13 }
  0x1b   : > { %954 = vmatmul.msk.f32.vlgmr.msra.gmra.mxu0 %vm283_vm0, %v254_v3  ;;  %957 = vmatmul.msk.f32.vlgmr.msra.gmra.mxu1 %vm283_vm0, %v254_v3  ;;  %s867_s27 = sshll.u32 %s242_s15, 4  ;;  %s868_s27 = int_to_ptr.vmem [resolvable:$true] %s867_s27 }
  0x1c   : > { %960 = vmatmul.msk.f32.vlgmr.msra.gmra.mxu2 %vm283_vm0, %v254_v3  ;;  %963 = vmatmul.msk.f32.vlgmr.msra.gmra.mxu3 %vm283_vm0, %v254_v3  ;;  %p1076_p5 = pnand %p1075_p3, %p1071_p0 }
  0x1d   : > { %464 = vmatpush.msrb.mxu2 %v263_v8  ;;  %490 = vmatpush.msrb.mxu3 %v264_v9 }
  0x1e   : > { %412 = vmatpush.msrb.mxu0 %v261_v10  ;;  %438 = vmatpush.msrb.mxu1 %v262_v11 }
  0x1f   : > { %270 = vperm.xlu0 %1050, %v265_v12   ;;  %676 = vperm.xlu1 %1051, %v673_v14  }
  0x23   : > { %955 = vmatmul.msk.f32.gmra.mxu0 %vm283_vm0, %v255_v13  ;;  %958 = vmatmul.msk.f32.gmra.mxu1 %vm283_vm0, %v255_v13 }
  0x24   : > { %961 = vmatmul.msk.f32.gmra.mxu2 %vm283_vm0, %v255_v13  ;;  %964 = vmatmul.msk.f32.gmra.mxu3 %vm283_vm0, %v255_v13 }
  0x2b   : > { %956 = vmatmul.msk.f32.gmra.mxu0 %vm283_vm0, %v256_v15  ;;  %959 = vmatmul.msk.f32.gmra.mxu1 %vm283_vm0, %v256_v15 }
  0x2c   : > { %962 = vmatmul.msk.f32.gmra.mxu2 %vm283_vm0, %v256_v15  ;;  %965 = vmatmul.msk.f32.gmra.mxu3 %vm283_vm0, %v256_v15 }
  0x33   : > { %966 = vmatmul.msk.f32.vlgmr.msrb.gmra.mxu0 %vm283_vm0, %v254_v3  ;;  %969 = vmatmul.msk.f32.vlgmr.msrb.gmra.mxu1 %vm283_vm0, %v254_v3 }
  0x34   : > { %972 = vmatmul.msk.f32.vlgmr.msrb.gmra.mxu2 %vm283_vm0, %v254_v3  ;;  %975 = vmatmul.msk.f32.vlgmr.msrb.gmra.mxu3 %vm283_vm0, %v254_v3 }
  0x3b   : > { %967 = vmatmul.msk.f32.gmra.mxu0 %vm283_vm0, %v255_v13  ;;  %970 = vmatmul.msk.f32.gmra.mxu1 %vm283_vm0, %v255_v13 }
  0x3c   : > { %973 = vmatmul.msk.f32.gmra.mxu2 %vm283_vm0, %v255_v13  ;;  %976 = vmatmul.msk.f32.gmra.mxu3 %vm283_vm0, %v255_v13 }
  0x43   : > { %968 = vmatmul.msk.f32.gmra.mxu0 %vm283_vm0, %v256_v15  ;;  %971 = vmatmul.msk.f32.gmra.mxu1 %vm283_vm0, %v256_v15 }
  0x44   : > { %974 = vmatmul.msk.f32.gmra.mxu2 %vm283_vm0, %v256_v15  ;;  %977 = vmatmul.msk.f32.gmra.mxu3 %vm283_vm0, %v256_v15 }
  0x88   : > { %v1268_v16 = vpop.permute.xlu0 %275  ;;  %v1278_v40 = vpop.permute.xlu1 %280 }
  0x91   : > { %v1270_v19 = vpop.permute.xlu0 %270 }
  0x98   : > { %v310_v17 = vpop.f32.mrf.mxu0  ;;  %v336_v18 = vpop.f32.mrf.mxu1 }
  0x99   : > { %v311_v20 = vadd.f32 %v310_v17, %v1270_v19  ;;  %v337_v21 = vadd.f32 %v336_v18, %v1270_v19 }
  0x9b   : > { %v525_v29 = vmul.f32 0.01, %v311_v20  ;;  %v526_v30 = vmul.f32 0.01, %v337_v21  ;;  %vm501_vm1 = vcmp.ge.f32.partialorder %v311_v20, 0.0  ;;  %vm502_vm2 = vcmp.ge.f32.partialorder %v337_v21, 0.0 }
  0x9d   : > { %v549_v38 = vsel %vm501_vm1, %v311_v20, %v525_v29  ;;  %v550_v39 = vsel %vm502_vm2, %v337_v21, %v526_v30 }
  0x9f   : > { %v362_v23 = vpop.f32.mrf.mxu2  ;;  %v388_v24 = vpop.f32.mrf.mxu3 }
  0xa0   : > { %v313_v25 = vpop.f32.mrf.mxu0  ;;  %v339_v26 = vpop.f32.mrf.mxu1  ;;  %v363_v34 = vadd.f32 %v362_v23, %v1270_v19  ;;  %v389_v35 = vadd.f32 %v388_v24, %v1270_v19 }
  0xa1   : > { %v314_v27 = vadd.f32 %v313_v25, %v1268_v16  ;;  %v340_v28 = vadd.f32 %v339_v26, %v1268_v16 }
  0xa2   : > { %v527_v43 = vmul.f32 0.01, %v363_v34  ;;  %v528_v44 = vmul.f32 0.01, %v389_v35  ;;  %vm503_vm6 = vcmp.ge.f32.partialorder %v363_v34, 0.0  ;;  %vm504_vm7 = vcmp.ge.f32.partialorder %v389_v35, 0.0 }
  0xa3   : > { %vm509_vm3 = vcmp.ge.f32.partialorder %v314_v27, 0.0  ;;  %v533_v32 = vmul.f32 0.01, %v314_v27  ;;  %vm510_vm4 = vcmp.ge.f32.partialorder %v340_v28, 0.0  ;;  %v534_v33 = vmul.f32 0.01, %v340_v28 }
  0xa4   : > { %v551_v60 = vsel %vm503_vm6, %v363_v34, %v527_v43  ;;  %v552_v61 = vsel %vm504_vm7, %v389_v35, %v528_v44 }
  0xa5   : > { %v557_v36 = vsel %vm509_vm3, %v314_v27, %v533_v32  ;;  %v558_v37 = vsel %vm510_vm4, %v340_v28, %v534_v33 }
  0xa6   : > { %696 = vmatpush.msra.mxu0 %v557_v36  ;;  %716 = vmatpush.msra.mxu1 %v558_v37 }
  0xa7   : > { %v365_v41 = vpop.f32.mrf.mxu2  ;;  %v391_v42 = vpop.f32.mrf.mxu3 }
  0xa8   : > { %v366_v45 = vadd.f32 %v365_v41, %v1268_v16  ;;  %v392_v46 = vadd.f32 %v391_v42, %v1268_v16  ;;  %v316_v47 = vpop.f32.mrf.mxu0  ;;  %v342_v48 = vpop.f32.mrf.mxu1  ;;  %697 = vmatpush.msra.mxu0 %v549_v38  ;;  %717 = vmatpush.msra.mxu1 %v550_v39 }
  0xa9   : > { %v317_v49 = vadd.f32 %v316_v47, %v1278_v40  ;;  %v343_v50 = vadd.f32 %v342_v48, %v1278_v40 }
  0xaa   : > { %vm511_vm8 = vcmp.ge.f32.partialorder %v366_v45, 0.0  ;;  %v535_v51 = vmul.f32 0.01, %v366_v45  ;;  %vm512_vm9 = vcmp.ge.f32.partialorder %v392_v46, 0.0  ;;  %v536_v52 = vmul.f32 0.01, %v392_v46 }
  0xab   : > { %vm517_vm10 = vcmp.ge.f32.partialorder %v317_v49, 0.0  ;;  %v541_v53 = vmul.f32 0.01, %v317_v49  ;;  %v542_v54 = vmul.f32 0.01, %v343_v50  ;;  %vm518_vm11 = vcmp.ge.f32.partialorder %v343_v50, 0.0 }
  0xac   : > { %v559_v55 = vsel %vm511_vm8, %v366_v45, %v535_v51  ;;  %v560_v56 = vsel %vm512_vm9, %v392_v46, %v536_v52 }
  0xad   : > { %736 = vmatpush.msra.mxu2 %v559_v55  ;;  %756 = vmatpush.msra.mxu3 %v560_v56  ;;  %v565_v57 = vsel %vm517_vm10, %v317_v49, %v541_v53  ;;  %v566_v58 = vsel %vm518_vm11, %v343_v50, %v542_v54 }
  0xae   : > { %978 = vmatpush.msk.msra.mxu0 %vm624_vm5, %v565_v57  ;;  %718 = vmatpush.msra.mxu1 %v566_v58 }
  0xaf   : > { %v368_v62 = vpop.f32.mrf.mxu2  ;;  %v394_v63 = vpop.f32.mrf.mxu3  ;;  %737 = vmatpush.msra.mxu2 %v551_v60  ;;  %757 = vmatpush.msra.mxu3 %v552_v61 }
  0xb0   : > { %v369_v0 = vadd.f32 %v368_v62, %v1278_v40  ;;  %v395_v1 = vadd.f32 %v394_v63, %v1278_v40  ;;  %979 = vmatmul.msk.f32.vlgmr.msra.gmra.mxu0 %vm679_vm12, %v1287_v59  ;;  %980 = vmatmul.msk.f32.vlgmr.msra.gmra.mxu1 %vm679_vm12, %v1287_v59  ;;  %v414_v2 = vpop.f32.mrf.mxu0  ;;  %v440_v3 = vpop.f32.mrf.mxu1 }
  0xb1   : > { %v415_v8 = vadd.f32 %v414_v2, %v1270_v19  ;;  %v441_v9 = vadd.f32 %v440_v3, %v1270_v19 }
  0xb2   : > { %v543_v4 = vmul.f32 0.01, %v369_v0  ;;  %v544_v5 = vmul.f32 0.01, %v395_v1  ;;  %vm519_vm13 = vcmp.ge.f32.partialorder %v369_v0, 0.0  ;;  %vm520_vm14 = vcmp.ge.f32.partialorder %v395_v1, 0.0 }
  0xb3   : > { %v529_v17 = vmul.f32 0.01, %v415_v8  ;;  %v530_v18 = vmul.f32 0.01, %v441_v9  ;;  %vm505_vm1 = vcmp.ge.f32.partialorder %v415_v8, 0.0  ;;  %vm506_vm2 = vcmp.ge.f32.partialorder %v441_v9, 0.0 }
  0xb4   : > { %v567_v6 = vsel %vm519_vm13, %v369_v0, %v543_v4  ;;  %v568_v7 = vsel %vm520_vm14, %v395_v1, %v544_v5 }
  0xb5   : > { %738 = vmatpush.msra.mxu2 %v567_v6  ;;  %758 = vmatpush.msra.mxu3 %v568_v7  ;;  %v553_v28 = vsel %vm505_vm1, %v415_v8, %v529_v17  ;;  %v554_v29 = vsel %vm506_vm2, %v441_v9, %v530_v18 }
  0xb6   : > { %981 = vmatmul.msk.f32.vlgmr.msra.gmra.mxu2 %vm679_vm12, %v1287_v59  ;;  %982 = vmatmul.msk.f32.vlgmr.msra.gmra.mxu3 %vm679_vm12, %v1287_v59 }
  0xb7   : > { %v466_v10 = vpop.f32.mrf.mxu2  ;;  %v492_v11 = vpop.f32.mrf.mxu3 }
  0xb8   : > { %v417_v12 = vpop.f32.mrf.mxu0  ;;  %v443_v13 = vpop.f32.mrf.mxu1  ;;  %v467_v22 = vadd.f32 %v466_v10, %v1270_v19  ;;  %v493_v23 = vadd.f32 %v492_v11, %v1270_v19 }
  0xb9   : > { %v418_v14 = vadd.f32 %v417_v12, %v1268_v16  ;;  %v444_v15 = vadd.f32 %v443_v13, %v1268_v16 }
  0xba   : > { %v531_v30 = vmul.f32 0.01, %v467_v22  ;;  %v532_v31 = vmul.f32 0.01, %v493_v23  ;;  %vm507_vm3 = vcmp.ge.f32.partialorder %v467_v22, 0.0  ;;  %vm508_vm4 = vcmp.ge.f32.partialorder %v493_v23, 0.0 }
  0xbb   : > { %vm513_vm15 = vcmp.ge.f32.partialorder %v418_v14, 0.0  ;;  %v537_v20 = vmul.f32 0.01, %v418_v14  ;;  %vm514_vm0 = vcmp.ge.f32.partialorder %v444_v15, 0.0  ;;  %v538_v21 = vmul.f32 0.01, %v444_v15 }
  0xbc   : > { %v555_v45 = vsel %vm507_vm3, %v467_v22, %v531_v30  ;;  %v556_v46 = vsel %vm508_vm4, %v493_v23, %v532_v31 }
  0xbd   : > { %v561_v24 = vsel %vm513_vm15, %v418_v14, %v537_v20  ;;  %v562_v25 = vsel %vm514_vm0, %v444_v15, %v538_v21 }
  0xbe   : > { %776 = vmatpush.msrb.mxu0 %v561_v24  ;;  %796 = vmatpush.msrb.mxu1 %v562_v25 }
  0xbf   : > { %v469_v26 = vpop.f32.mrf.mxu2  ;;  %v495_v27 = vpop.f32.mrf.mxu3 }
  0xc0   : > { %v470_v32 = vadd.f32 %v469_v26, %v1268_v16  ;;  %v496_v33 = vadd.f32 %v495_v27, %v1268_v16  ;;  %v420_v34 = vpop.f32.mrf.mxu0  ;;  %v446_v35 = vpop.f32.mrf.mxu1  ;;  %777 = vmatpush.msrb.mxu0 %v553_v28  ;;  %797 = vmatpush.msrb.mxu1 %v554_v29 }
  0xc1   : > { %v421_v19 = vadd.f32 %v420_v34, %v1278_v40  ;;  %v447_v36 = vadd.f32 %v446_v35, %v1278_v40 }
  0xc2   : > { %vm515_vm5 = vcmp.ge.f32.partialorder %v470_v32, 0.0  ;;  %v539_v37 = vmul.f32 0.01, %v470_v32  ;;  %vm516_vm6 = vcmp.ge.f32.partialorder %v496_v33, 0.0  ;;  %v540_v38 = vmul.f32 0.01, %v496_v33 }
  0xc3   : > { %v545_v39 = vmul.f32 0.01, %v421_v19  ;;  %v546_v41 = vmul.f32 0.01, %v447_v36  ;;  %vm521_vm7 = vcmp.ge.f32.partialorder %v421_v19, 0.0  ;;  %vm522_vm8 = vcmp.ge.f32.partialorder %v447_v36, 0.0 }
  0xc4   : > { %v563_v42 = vsel %vm515_vm5, %v470_v32, %v539_v37  ;;  %v564_v16 = vsel %vm516_vm6, %v496_v33, %v540_v38 }
  0xc5   : > { %816 = vmatpush.msrb.mxu2 %v563_v42  ;;  %836 = vmatpush.msrb.mxu3 %v564_v16  ;;  %v569_v43 = vsel %vm521_vm7, %v421_v19, %v545_v39  ;;  %v570_v44 = vsel %vm522_vm8, %v447_v36, %v546_v41 }
  0xc6   : > { %778 = vmatpush.msrb.mxu0 %v569_v43  ;;  %798 = vmatpush.msrb.mxu1 %v570_v44 }
  0xc7   : > { %v472_v47 = vpop.f32.mrf.mxu2  ;;  %v498_v48 = vpop.f32.mrf.mxu3  ;;  %817 = vmatpush.msrb.mxu2 %v555_v45  ;;  %837 = vmatpush.msrb.mxu3 %v556_v46 }
  0xc8   : > { %v473_v49 = vadd.f32 %v472_v47, %v1278_v40  ;;  %v499_v50 = vadd.f32 %v498_v48, %v1278_v40  ;;  %983 = vmatmul.msk.f32.vlgmr.msrb.gmra.mxu0 %vm679_vm12, %v1287_v59  ;;  %984 = vmatmul.msk.f32.vlgmr.msrb.gmra.mxu1 %vm679_vm12, %v1287_v59  ;;  %v677_v40 = vpop.permute.xlu1 %676 }
  0xca   : > { %v547_v51 = vmul.f32 0.01, %v473_v49  ;;  %v548_v52 = vmul.f32 0.01, %v499_v50  ;;  %vm523_vm9 = vcmp.ge.f32.partialorder %v473_v49, 0.0  ;;  %vm524_vm10 = vcmp.ge.f32.partialorder %v499_v50, 0.0 }
  0xcc   : > { %v571_v53 = vsel %vm523_vm9, %v473_v49, %v547_v51  ;;  %v572_v54 = vsel %vm524_vm10, %v499_v50, %v548_v52 }
  0xcd   : > { %818 = vmatpush.msrb.mxu2 %v571_v53  ;;  %838 = vmatpush.msrb.mxu3 %v572_v54 }
  0xce   : > { %985 = vmatmul.msk.f32.vlgmr.msrb.gmra.mxu2 %vm679_vm12, %v1287_v59  ;;  %986 = vmatmul.msk.f32.vlgmr.msrb.gmra.mxu3 %vm679_vm12, %v1287_v59 }
 0x12d   : > { %v700_v55 = vpop.f32.mrf.mxu0  ;;  %v720_v56 = vpop.f32.mrf.mxu1 }
 0x12e   : > { %v701_v57 = vadd.f32 %v700_v55, %v677_v40  ;;  %v721_v58 = vadd.f32 %v720_v56, %v677_v40 }
 0x130   : > { %843 = vst [vmem:[%s242_s15] sm:$0xff] %v701_v57 }
 0x131   : > { %844 = vst [vmem:[%s242_s15 + $0x8] sm:$0xff] %v721_v58 }
 0x139   : > { %v740_v60 = vpop.f32.mrf.mxu2  ;;  %v760_v61 = vpop.f32.mrf.mxu3 }
 0x13a   : > { %v741_v62 = vadd.f32 %v740_v60, %v677_v40  ;;  %v761_v63 = vadd.f32 %v760_v61, %v677_v40 }
 0x13c   : > { %845 = vst [vmem:[%s242_s15 + $0x10] sm:$0xff] %v741_v62 }
 0x13d   : > { %846 = vst [vmem:[%s242_s15 + $0x18] sm:$0xff] %v761_v63 }
 0x145   : > { %v780_v0 = vpop.f32.mrf.mxu0  ;;  %v800_v59 = vpop.f32.mrf.mxu1 }
 0x146   : > { %v781_v1 = vadd.f32 %v780_v0, %v677_v40  ;;  %v801_v2 = vadd.f32 %v800_v59, %v677_v40 }
 0x148   : > { %847 = vst [vmem:[%s242_s15 + $0x20] sm:$0xff] %v781_v1 }
 0x149   : > { %848 = vst [vmem:[%s242_s15 + $0x28] sm:$0xff] %v801_v2 }
 0x151   : > { %v820_v3 = vpop.f32.mrf.mxu2  ;;  %v840_v4 = vpop.f32.mrf.mxu3 }
 0x152   : > { %v821_v5 = vadd.f32 %v820_v3, %v677_v40  ;;  %v841_v6 = vadd.f32 %v840_v4, %v677_v40 }
 0x154   : > { %849 = vst [vmem:[%s242_s15 + $0x30] sm:$0xff] %v821_v5 }
 0x155   : > { %850 = vst [vmem:[%s242_s15 + $0x38] sm:$0xff] %v841_v6 }
 0x156   : > { %1079 = shalt.err (!%p1076_p5)
}
 0x157   : > { %994 = dma.vmem_to_hbm [thread:$0]  (%p1203_p4), %s868_s27, 1024, %s870_s29, %s852_s7  }
 0x158 PF: > { %p1000_p6 = scmp.ge.s32.totalorder %s1130_s23, 2  ;;  %s881_s13 = sand.u32 1, %s1110_s18  }
 0x159   : > { %s882_s15 = scalar_lea.sflag [#allocation3], %s881_s13 }
 0x15a   : > { %p997_p7 = pnand %p1000_p6, %p1210_p8 }
 0x15c   : > { %p998_p9 = pneg %p997_p7 }
 0x15e   : > { %1105 = dma.done.wait (%p998_p9), %s882_s15, 1024  }
 0x15f   : > { %1107 = vsyncadd (%p998_p9), %s882_s15, 4294966272  ;;  %s18_s23 = sadd.s32 1, %s1130_s23   ;;  %s1373_s18 = smov %s1114_s19 }
 0x160   : > { %p15_p10 = scmp.ge.s32.totalorder %s18_s23, 4   ;;  %s1374_s19 = smov %s1118_s20 }
 0x161   : > { %s1375_s20 = smov %s1216_s6  ;;  %s1376_s21 = smov %s1126_s22 }
 0x162   : > { %s1377_s22 = smov %s1379_s26  ;;  %17 = sbr.rel (!%p15_p10) target bundleno = 4 (0x4), region = 75 }
 0x167   :  { %888 = vsyncpa [#allocation3], 1 }
 0x168   :  { %890 = vsyncpa [#allocation3 + $0x1], 1 }

</bundles_post_ra>
